<compile_context>
chip_gen: v7x
topology: tpu7x:2x2x1
jax: 0.10.0
libtpu: 0.0.40
codegen_flags: <defaults>
</compile_context>

<pallas_src>
import functools

import jax
import jax.numpy as jnp
from jax.experimental import pallas as pl
from jax.experimental.pallas import tpu as pltpu


def _round_up(x, m):
    return ((x + m - 1) // m) * m


def _vmem_capacity_bytes():
    """Physical VMEM of the local TPU; conservative fallback = v7x's 64 MiB."""
    try:
        info = pltpu.get_tpu_info()
        cap = getattr(info, "vmem_capacity_bytes", None)
        if cap:
            return int(cap)
    except Exception:
        pass
    return 64 * 1024 * 1024


# ----------------------------------------------------------------------------
# Fused kernel: replication-pad + unfold + value-embedding linear + (pos+bias) add
# ----------------------------------------------------------------------------
def _patch_embed_kernel(x_ref, w_ref, pb_ref, o_ref, *, patch_len, stride, num_patches):
    tm, T = x_ref.shape
    d_model = w_ref.shape[1]
    w = w_ref[...]                                        # (patch_len, d_model), resident

    # Static Python loop over patches (num_patches is small and compile-time static).
    for p in range(num_patches):
        start = p * stride
        n_valid = min(patch_len, max(0, T - start))       # static int
        if n_valid == patch_len:
            patch = x_ref[:, start:start + patch_len]     # direct VMEM slice, no padded copy
        else:
            # Replication padding: columns past T repeat x[:, T-1].
            rep = jnp.broadcast_to(x_ref[:, T - 1:T], (tm, patch_len - n_valid))
            if n_valid > 0:
                patch = jnp.concatenate([x_ref[:, start:start + n_valid], rep], axis=-1)
            else:
                patch = rep
        y = jnp.dot(patch, w, preferred_element_type=jnp.float32)   # (tm, d_model), f32 acc
        y = y + pb_ref[p:p + 1, :]                                  # pos[p] + bias (f32)
        # Lane-dense d_model-wide store into the flattened (tm, P*d_model) output block.
        o_ref[:, p * d_model:(p + 1) * d_model] = y.astype(o_ref.dtype)


# ----------------------------------------------------------------------------
# Wrapper
# ----------------------------------------------------------------------------
def temporal_patch_embedding(x, w_t, b, pos, *, patch_len, stride, out_dtype=None):
    """Forward of TemporalPatchEmbedding.

    x    : (B, C, T)
    w_t  : (patch_len, d_model)  value_embedding weight, pre-transposed (torch stores (d_model, patch_len))
    b    : (d_model,)            value_embedding bias
    pos  : (max_num_patches, d_model) positional embedding table

    Returns (y, n_vars) with y: (B*C, num_patches, d_model).
    """
    B, C, T = x.shape
    d_model = w_t.shape[1]
    num_patches = (T - patch_len) // stride + 2          # matches pad+unfold of the module
    if pos.shape[0] < num_patches:
        raise ValueError(f"pos_embedding has {pos.shape[0]} rows < num_patches={num_patches}")
    M = B * C
    out_dtype = x.dtype if out_dtype is None else out_dtype

    x2 = x.reshape(M, T)                                 # no dtype upcast in the wrapper
    # Fold bias into the positional table once at trace time (f32 add path in-kernel).
    pb = pos[:num_patches].astype(jnp.float32) + b.reshape(1, -1).astype(jnp.float32)

    xb = jnp.dtype(x.dtype).itemsize
    ob = jnp.dtype(out_dtype).itemsize
    wb = jnp.dtype(w_t.dtype).itemsize

    # ---- VMEM-budgeted row tile -------------------------------------------------
    cap = _vmem_capacity_bytes()
    resident = patch_len * d_model * wb + num_patches * d_model * 4      # weight + pos tables
    budget = cap // 2 - resident                                         # leave half for scratch
    in_row = T * xb
    out_row = num_patches * d_model * ob
    per_row = 2 * (in_row + out_row) + 2 * d_model * 4 + 2 * patch_len * 4
    tm = max(8, min(1024, ((max(budget, 0) // per_row) // 8) * 8))
    if M >= 32:
        # Keep >= ~4 grid steps so the pipeline and both v7x TensorCores stay busy.
        tm = min(tm, max(8, ((M // 4) // 8) * 8))
    tm = min(tm, _round_up(M, 8))

    M_pad = _round_up(M, tm)
    if M_pad != M:
        x2 = jnp.pad(x2, ((0, M_pad - M), (0, 0)))       # pad rows instead of grid=(1,)
    grid = (M_pad // tm,)

    need = 2 * tm * (in_row + out_row) + resident + tm * (2 * d_model * 4 + 2 * patch_len * 4) \
        + (4 << 20)
    vmem_limit = int(min(cap * 9 // 10, max(need, 32 << 20)))

    cost = pl.CostEstimate(
        flops=2 * M * num_patches * patch_len * d_model,
        transcendentals=0,
        bytes_accessed=int(M * T * xb + M * num_patches * d_model * ob
                           + patch_len * d_model * wb + num_patches * d_model * 4),
    )

    flat_out = num_patches * d_model
    out = pl.pallas_call(
        functools.partial(_patch_embed_kernel, patch_len=patch_len,
                          stride=stride, num_patches=num_patches),
        grid=grid,
        in_specs=[
            pl.BlockSpec((tm, T), lambda i: (i, 0)),                    # rows stream
            pl.BlockSpec((patch_len, d_model), lambda i: (0, 0)),       # resident weight
            pl.BlockSpec((num_patches, d_model), lambda i: (0, 0)),     # resident pos+bias
        ],
        out_specs=pl.BlockSpec((tm, flat_out), lambda i: (i, 0)),       # lane-dense flattened out
        out_shape=jax.ShapeDtypeStruct((M_pad, flat_out), out_dtype),
        compiler_params=pltpu.CompilerParams(
            dimension_semantics=("parallel",),
            vmem_limit_bytes=vmem_limit),
        cost_estimate=cost,
    )(x2, w_t, pb)

    if M_pad != M:
        out = out[:M]
    out = out.reshape(M, num_patches, d_model)           # free: contiguous row-major reshape
    return out, C


# ----------------------------------------------------------------------------
# Pure-JAX reference (mirrors the PyTorch forward) for correctness checking
# ----------------------------------------------------------------------------
def reference(x, w_t, b, pos, patch_len, stride):
    B, C, T = x.shape
    xp = jnp.concatenate([x, jnp.repeat(x[..., -1:], stride, axis=-1)], axis=-1)
    P = (T - patch_len) // stride + 2
    idx = (jnp.arange(P) * stride)[:, None] + jnp.arange(patch_len)[None, :]
    patches = xp[:, :, idx]                              # (B, C, P, patch_len)
    y = patches @ w_t + b.reshape(-1) + pos[:P]
    return y.reshape(B * C, P, -1)


# ----------------------------------------------------------------------------
if __name__ == "__main__":
    root = jax.random.PRNGKey(0)

    def run_case(key, B, C, T, patch_len, stride, d_model):
        k_w, k_b, k_pos, k_x = jax.random.split(key, 4)
        w_t = 0.02 * jax.random.normal(k_w, (patch_len, d_model), jnp.float32)
        b = 0.02 * jax.random.normal(k_b, (d_model,), jnp.float32)
        pos = jax.random.normal(k_pos, (64, d_model), jnp.float32)
        x = jax.random.normal(k_x, (B, C, T), jnp.float32)

        y, n_vars = temporal_patch_embedding(x, w_t, b, pos,
                                             patch_len=patch_len, stride=stride)
        y = jax.block_until_ready(y)

        P = (T - patch_len) // stride + 2
        assert y.shape == (B * C, P, d_model), y.shape
        assert n_vars == C
        assert bool(jnp.all(jnp.isfinite(y)))
        y_ref = reference(x, w_t, b, pos, patch_len, stride)
        assert bool(jnp.allclose(y, y_ref, atol=1e-5, rtol=1e-5)), \
            float(jnp.max(jnp.abs(y - y_ref)))

    k1, k2 = jax.random.split(root)
    # Non-overlapping patches (stride == patch_len), T divisible -> fully replicated last patch.
    run_case(k1, B=2, C=4, T=16, patch_len=4, stride=4, d_model=16)
    # Overlapping patches with a ragged tail (partial replication of the last patch).
    run_case(k2, B=2, C=4, T=17, patch_len=6, stride=3, d_model=16)

    print("KERNEL_OK")
</pallas_src>

<mosaic_0001>
module attributes {stable_mosaic.version = 11 : i64} {
  func.func @_patch_embed_kernel(%arg0: i32, %arg1: memref<8x16xf32, #tpu.memory_space<vmem>>, %arg2: memref<4x16xf32, #tpu.memory_space<vmem>>, %arg3: memref<5x16xf32, #tpu.memory_space<vmem>>, %arg4: memref<8x80xf32, #tpu.memory_space<vmem>>) attributes {dimension_semantics = [#tpu.dimension_semantics<parallel>], iteration_bounds = array<i64: 1>, scalar_prefetch = 0 : i64, scratch_operands = 0 : i64, tpu.core_type = #tpu.core_type<tc>, window_params = [{transform_indices = @transform_0, window_bounds = array<i64: 8, 16>}, {pipeline_mode = #tpu.pipeline_mode<synchronous>, transform_indices = @transform_1, window_bounds = array<i64: 4, 16>}, {pipeline_mode = #tpu.pipeline_mode<synchronous>, transform_indices = @transform_2, window_bounds = array<i64: 5, 16>}, {transform_indices = @transform_3, window_bounds = array<i64: 8, 80>}]} {
    %c0 = arith.constant 0 : index
    %c0_0 = arith.constant 0 : index
    %0 = vector.load %arg2[%c0, %c0_0] : memref<4x16xf32, #tpu.memory_space<vmem>>, vector<4x16xf32>
    %c0_1 = arith.constant 0 : index
    %c0_2 = arith.constant 0 : index
    %1 = vector.load %arg1[%c0_1, %c0_2] : memref<8x16xf32, #tpu.memory_space<vmem>>, vector<8x4xf32>
    %cst = arith.constant dense<0.000000e+00> : vector<8x16xf32>
    %2 = tpu.matmul %1, %0, %cst {dimension_numbers = #tpu.dot_dimension_numbers<[1], [0], [0], [1], [0, 0, 1, 1], [], []>} : vector<8x4xf32>, vector<4x16xf32>, vector<8x16xf32> -> vector<8x16xf32>
    %c0_3 = arith.constant 0 : index
    %c0_4 = arith.constant 0 : index
    %3 = vector.load %arg3[%c0_3, %c0_4] : memref<5x16xf32, #tpu.memory_space<vmem>>, vector<1x16xf32>
    %4 = vector.broadcast %3 : vector<1x16xf32> to vector<8x16xf32>
    %5 = arith.addf %2, %4 : vector<8x16xf32>
    %c0_5 = arith.constant 0 : index
    %c0_6 = arith.constant 0 : index
    %6 = vector.load %arg4[%c0_5, %c0_6] : memref<8x80xf32, #tpu.memory_space<vmem>>, vector<8x16xf32>
    tpu.vector_store %arg4[%c0_5, %c0_6], %5 {strides = array<i32>} : memref<8x80xf32, #tpu.memory_space<vmem>>, vector<8x16xf32>,
    %c0_7 = arith.constant 0 : index
    %c4 = arith.constant 4 : index
    %7 = vector.load %arg1[%c0_7, %c4] : memref<8x16xf32, #tpu.memory_space<vmem>>, vector<8x4xf32>
    %cst_8 = arith.constant dense<0.000000e+00> : vector<8x16xf32>
    %8 = tpu.matmul %7, %0, %cst_8 {dimension_numbers = #tpu.dot_dimension_numbers<[1], [0], [0], [1], [0, 0, 1, 1], [], []>} : vector<8x4xf32>, vector<4x16xf32>, vector<8x16xf32> -> vector<8x16xf32>
    %c1 = arith.constant 1 : index
    %c0_9 = arith.constant 0 : index
    %9 = vector.load %arg3[%c1, %c0_9] : memref<5x16xf32, #tpu.memory_space<vmem>>, vector<1x16xf32>
    %10 = vector.broadcast %9 : vector<1x16xf32> to vector<8x16xf32>
    %11 = arith.addf %8, %10 : vector<8x16xf32>
    %c0_10 = arith.constant 0 : index
    %c16 = arith.constant 16 : index
    %12 = vector.load %arg4[%c0_10, %c16] : memref<8x80xf32, #tpu.memory_space<vmem>>, vector<8x16xf32>
    tpu.vector_store %arg4[%c0_10, %c16], %11 {strides = array<i32>} : memref<8x80xf32, #tpu.memory_space<vmem>>, vector<8x16xf32>,
    %c0_11 = arith.constant 0 : index
    %c8 = arith.constant 8 : index
    %13 = vector.load %arg1[%c0_11, %c8] : memref<8x16xf32, #tpu.memory_space<vmem>>, vector<8x4xf32>
    %cst_12 = arith.constant dense<0.000000e+00> : vector<8x16xf32>
    %14 = tpu.matmul %13, %0, %cst_12 {dimension_numbers = #tpu.dot_dimension_numbers<[1], [0], [0], [1], [0, 0, 1, 1], [], []>} : vector<8x4xf32>, vector<4x16xf32>, vector<8x16xf32> -> vector<8x16xf32>
    %c2 = arith.constant 2 : index
    %c0_13 = arith.constant 0 : index
    %15 = vector.load %arg3[%c2, %c0_13] : memref<5x16xf32, #tpu.memory_space<vmem>>, vector<1x16xf32>
    %16 = vector.broadcast %15 : vector<1x16xf32> to vector<8x16xf32>
    %17 = arith.addf %14, %16 : vector<8x16xf32>
    %c0_14 = arith.constant 0 : index
    %c32 = arith.constant 32 : index
    %18 = vector.load %arg4[%c0_14, %c32] : memref<8x80xf32, #tpu.memory_space<vmem>>, vector<8x16xf32>
    tpu.vector_store %arg4[%c0_14, %c32], %17 {strides = array<i32>} : memref<8x80xf32, #tpu.memory_space<vmem>>, vector<8x16xf32>,
    %c0_15 = arith.constant 0 : index
    %c12 = arith.constant 12 : index
    %19 = vector.load %arg1[%c0_15, %c12] : memref<8x16xf32, #tpu.memory_space<vmem>>, vector<8x4xf32>
    %cst_16 = arith.constant dense<0.000000e+00> : vector<8x16xf32>
    %20 = tpu.matmul %19, %0, %cst_16 {dimension_numbers = #tpu.dot_dimension_numbers<[1], [0], [0], [1], [0, 0, 1, 1], [], []>} : vector<8x4xf32>, vector<4x16xf32>, vector<8x16xf32> -> vector<8x16xf32>
    %c3 = arith.constant 3 : index
    %c0_17 = arith.constant 0 : index
    %21 = vector.load %arg3[%c3, %c0_17] : memref<5x16xf32, #tpu.memory_space<vmem>>, vector<1x16xf32>
    %22 = vector.broadcast %21 : vector<1x16xf32> to vector<8x16xf32>
    %23 = arith.addf %20, %22 : vector<8x16xf32>
    %c0_18 = arith.constant 0 : index
    %c48 = arith.constant 48 : index
    %24 = vector.load %arg4[%c0_18, %c48] : memref<8x80xf32, #tpu.memory_space<vmem>>, vector<8x16xf32>
    tpu.vector_store %arg4[%c0_18, %c48], %23 {strides = array<i32>} : memref<8x80xf32, #tpu.memory_space<vmem>>, vector<8x16xf32>,
    %c0_19 = arith.constant 0 : index
    %c15 = arith.constant 15 : index
    %25 = vector.load %arg1[%c0_19, %c15] : memref<8x16xf32, #tpu.memory_space<vmem>>, vector<8x1xf32>
    %26 = vector.shape_cast %25 : vector<8x1xf32> to vector<8x1xf32>
    %27 = vector.broadcast %26 : vector<8x1xf32> to vector<8x4xf32>
    %cst_20 = arith.constant dense<0.000000e+00> : vector<8x16xf32>
    %28 = tpu.matmul %27, %0, %cst_20 {dimension_numbers = #tpu.dot_dimension_numbers<[1], [0], [0], [1], [0, 0, 1, 1], [], []>} : vector<8x4xf32>, vector<4x16xf32>, vector<8x16xf32> -> vector<8x16xf32>
    %c4_21 = arith.constant 4 : index
    %c0_22 = arith.constant 0 : index
    %29 = vector.load %arg3[%c4_21, %c0_22] : memref<5x16xf32, #tpu.memory_space<vmem>>, vector<1x16xf32>
    %30 = vector.broadcast %29 : vector<1x16xf32> to vector<8x16xf32>
    %31 = arith.addf %28, %30 : vector<8x16xf32>
    %c0_23 = arith.constant 0 : index
    %c64 = arith.constant 64 : index
    %32 = vector.load %arg4[%c0_23, %c64] : memref<8x80xf32, #tpu.memory_space<vmem>>, vector<8x16xf32>
    tpu.vector_store %arg4[%c0_23, %c64], %31 {strides = array<i32>} : memref<8x80xf32, #tpu.memory_space<vmem>>, vector<8x16xf32>,
    return
  }
  func.func @transform_0(%arg0: i32) -> (i32, i32) {
    %c0_i32 = arith.constant 0 : i32
    %c0_i32_0 = arith.constant 0 : i32
    return %arg0, %c0_i32 : i32, i32
  }
  func.func @transform_1(%arg0: i32) -> (i32, i32) {
    %c0_i32 = arith.constant 0 : i32
    %c0_i32_0 = arith.constant 0 : i32
    %c0_i32_1 = arith.constant 0 : i32
    return %c0_i32, %c0_i32_0 : i32, i32
  }
  func.func @transform_2(%arg0: i32) -> (i32, i32) {
    %c0_i32 = arith.constant 0 : i32
    %c0_i32_0 = arith.constant 0 : i32
    %c0_i32_1 = arith.constant 0 : i32
    return %c0_i32, %c0_i32_0 : i32, i32
  }
  func.func @transform_3(%arg0: i32) -> (i32, i32) {
    %c0_i32 = arith.constant 0 : i32
    %c0_i32_0 = arith.constant 0 : i32
    return %arg0, %c0_i32 : i32, i32
  }
}

</mosaic_0001>

<bundles_post_ra>
// kernel: tpu_custom_call.1
= control target key start
LH: loop header
LB: loop body
LE: loop exit
PB: predicated region body
PF: predicated region fallthrough
CT: control target
= control target key end

     0   :  { %8 = vsyncpa [#allocation3], 0  ;;  %s758_s0 = inlined_call_operand.hbm [shape: f32[8,16], index: 0, kind: input, shape index: {}]   ;;  %s759_s1 = inlined_call_operand.hbm [shape: f32[4,16], index: 1, kind: input, shape index: {}]   ;;  %s760_s2 = inlined_call_operand.hbm [shape: f32[5,16], index: 2, kind: input, shape index: {}]   ;;  %s761_s3 = inlined_call_operand.hbm [shape: f32[8,80], index: 3, kind: output, shape index: {}]  }
   0x1   :  { %9 = vsyncpa [#allocation6], 0 }
   0x2   :  { %10 = vsyncpa [#allocation4], 0  ;;  %s661_s12 = smov [#allocation5]   ;;  %s662_s14 = smov [#allocation2]  }
   0x3   :  { %s27_s13 = sshll.u32 %s661_s12, 4  ;;  %s17_s15 = sshll.u32 %s662_s14, 4  ;;  %s28_s13 = int_to_ptr.vmem [resolvable:$true] %s27_s13  ;;  %s18_s15 = int_to_ptr.vmem [resolvable:$true] %s17_s15 }
   0x4   :  { %s567_s18 = scalar_lea.hbm %s759_s1, 64 }
   0x5   :  { %p568_p0 = scmp.ne.s32.totalorder %s759_s1, %s567_s18  ;;  %p571_p1 = scmp.lt.u32.totalorder %s567_s18, %s759_s1 }
   0x7   :  { %p573_p2 = pnand %p571_p1, %p568_p0 }
   0x9   :  { %576 = shalt.err (!%p573_p2)
}
   0xa   :  { %s577_s23 = scalar_lea.vmem %s28_s13, 64  ;;  %p582_p4 = scmp.lt.s32.totalorder %s28_s13, %s28_s13 }
   0xb   :  { %p578_p3 = scmp.ne.s32.totalorder %s28_s13, %s577_s23  ;;  %p583_p5 = scmp.lt.s32.totalorder %s577_s23, %s577_s23 }
   0xd   :  { %p584_p6 = por %p583_p5, %p582_p4 }
   0xf   :  { %p585_p7 = pnand %p584_p6, %p578_p3 }
  0x11   :  { %588 = shalt.err (!%p585_p7)
}
  0x12   :  { %30 = dma.hbm_to_vmem [thread:$0]  %s759_s1, 64, %s28_s13, [#allocation6]  }
  0x13   :  { %s589_s28 = scalar_lea.hbm %s758_s0, 128 }
  0x14   :  { %p590_p8 = scmp.ne.s32.totalorder %s758_s0, %s589_s28  ;;  %p593_p9 = scmp.lt.u32.totalorder %s589_s28, %s758_s0 }
  0x16   :  { %p595_p10 = pnand %p593_p9, %p590_p8 }
  0x18   :  { %598 = shalt.err (!%p595_p10)
}
  0x19   :  { %s599_s6 = scalar_lea.vmem %s18_s15, 128  ;;  %p604_p12 = scmp.lt.s32.totalorder %s18_s15, %s18_s15 }
  0x1a   :  { %p600_p11 = scmp.ne.s32.totalorder %s18_s15, %s599_s6  ;;  %p605_p13 = scmp.lt.s32.totalorder %s599_s6, %s599_s6 }
  0x1c   :  { %p606_p0 = por %p605_p13, %p604_p12 }
  0x1e   :  { %p607_p1 = pnand %p606_p0, %p600_p11 }
  0x20   :  { %610 = shalt.err (!%p607_p1)
}
  0x21   :  { %20 = dma.hbm_to_vmem [thread:$0]  %s758_s0, 128, %s18_s15, [#allocation3]  }
  0x22   :  { %s663_s8 = smov [#allocation7]   ;;  %s611_s12 = scalar_lea.hbm %s760_s2, 128 }
  0x23   :  { %s37_s9 = sshll.u32 %s663_s8, 4  ;;  %p612_p2 = scmp.ne.s32.totalorder %s760_s2, %s611_s12  ;;  %s38_s9 = int_to_ptr.vmem [resolvable:$true] %s37_s9 }
  0x24   :  { %p615_p3 = scmp.lt.u32.totalorder %s611_s12, %s760_s2 }
  0x26   :  { %p617_p4 = pnand %p615_p3, %p612_p2 }
  0x28   :  { %620 = shalt.err (!%p617_p4)
}
  0x29   :  { %s621_s18 = scalar_lea.vmem %s38_s9, 128  ;;  %p626_p6 = scmp.lt.s32.totalorder %s38_s9, %s38_s9 }
  0x2a   :  { %p622_p5 = scmp.ne.s32.totalorder %s38_s9, %s621_s18  ;;  %p627_p7 = scmp.lt.s32.totalorder %s621_s18, %s621_s18 }
  0x2c   :  { %p628_p8 = por %p627_p7, %p626_p6 }
  0x2e   :  { %p629_p9 = pnand %p628_p8, %p622_p5 }
  0x30   :  { %632 = shalt.err (!%p629_p9)
}
  0x31   :  { %40 = dma.hbm_to_vmem [thread:$0]  %s760_s2, 128, %s38_s9, [#allocation6]  }
  0x32   :  { %655 = dma.done.wait [#allocation3], 128  }
  0x33   :  { %656 = vsyncadd [#allocation3], 4294967168 }
  0x34   :  { %657 = dma.done.wait [#allocation6], 192  }
  0x35   :  { %658 = vsyncadd [#allocation6], 4294967104  ;;  %v664_v0 = vmov 15   ;;  %v665_v1 = vmov 0.0   ;;  %vm666_vm0 = vmmov 0   ;;  %vm61_vm1 = vcmask 1043456  }
  0x36   :  { %566 = vset.pattern.permute.xlu0 %v664_v0  ;;  %527 = vmatprep.subr.mxu0 %v665_v1  ;;  %v398_v2 = vld [vmem:[#allocation2] sm:$0xff]  ;;  %v50_v3 = vld [vmem:[#allocation5] sm:$0xf]  ;;  %vm57_vm2 = vcmask 31744   ;;  %s667_s2 = smov 120   ;;  %s668_s19 = smov 124  }
  0x37   :  { %529 = vmatprep.mubr.msk.f32.mxu0 %vm666_vm0, %v665_v1  ;;  %532 = vmatprep.subr.mxu1 %v665_v1  ;;  %s669_s20 = smov 116   ;;  %v502_v8 = vld [vmem:[#allocation7] ss:$0 sm:$0xff]  ;;  %vm135_vm3 = vcmask 130048   ;;  %v508_v12 = vld [vmem:[#allocation7 + $0x2] ss:$0 sm:$0xff] }
  0x38   :  { %534 = vmatprep.mubr.msk.f32.mxu1 %vm666_vm0, %v665_v1  ;;  %401 = vperm.xlu0 %566, %v398_v2   ;;  %s670_s21 = smov 32   ;;  %v514_v16 = vld [vmem:[#allocation7 + $0x4] ss:$0 sm:$0xff]  ;;  %v505_v20 = vld [vmem:[#allocation7 + $0x1] ss:$0 sm:$0xff]  ;;  %s671_s22 = smov 64  }
  0x39   :  { %231 = vrot.lane.b32.xlu1 %v398_v2, %s667_s2  ;;  %528 = vmatpush3.msk.msra.mxu0 %vm61_vm1, %v50_v3  ;;  %v511_v24 = vld [vmem:[#allocation7 + $0x3] ss:$0 sm:$0xff]  ;;  %s672_s23 = smov 16   ;;  %s673_s24 = smov 48   ;;  %vm222_vm4 = vcmask 261248   ;;  %vm309_vm5 = vcmask 392448  }
  0x3a   :  { %533 = vmatpush3.msk.msra.mxu1 %vm61_vm1, %v50_v3  ;;  %530 = vmatmul.mubr.msk.f32.vlgmr.msra.gmra.mrb[0].mxu0 %vm57_vm2, %v398_v2  ;;  %s674_s25 = smov [#allocation8]   ;;  %vm396_vm6 = vcmask 523648   ;;  %vm484_vm7 = vcmask 654848  }
  0x3b   :  { %537 = vmatprep.subr.mxu0 %v665_v1  ;;  %539 = vmatprep.mubr.msk.f32.mxu0 %vm666_vm0, %v665_v1  ;;  %s492_s26 = sshll.u32 %s674_s25, 4  ;;  %s493_s26 = int_to_ptr.vmem [resolvable:$true] %s492_s26 }
  0x3c   :  { %538 = vmatpush3.msk.msra.mxu0 %vm61_vm1, %v50_v3  ;;  %144 = vrot.lane.b32.xlu0 %v398_v2, %s668_s19  ;;  %s633_s27 = scalar_lea.vmem %s493_s26, 128  ;;  %p638_p11 = scmp.lt.s32.totalorder %s493_s26, %s493_s26 }
  0x3d   :  { %318 = vrot.lane.b32.xlu1 %v398_v2, %s669_s20  ;;  %547 = vmatprep.subr.mxu0 %v665_v1  ;;  %p634_p10 = scmp.ne.s32.totalorder %s493_s26, %s633_s27  ;;  %p639_p12 = scmp.lt.s32.totalorder %s633_s27, %s633_s27 }
  0x3e   :  { %542 = vmatprep.subr.mxu1 %v665_v1 }
  0x3f   :  { %p640_p13 = por %p639_p12, %p638_p11 }
  0x41   :  { %p641_p0 = pnand %p640_p13, %p634_p10 }
  0xab   :  { %v232_v4 = vpop.permute.xlu1 %231 }
  0xac   :  { %540 = vmatmul.mubr.msk.f32.vlgmr.msra.gmra.mrb[2].mxu0 %vm57_vm2, %v232_v4 }
  0xad   :  { %548 = vmatpush3.msk.msra.mxu0 %vm61_vm1, %v50_v3  ;;  %549 = vmatprep.mubr.msk.f32.mxu0 %vm666_vm0, %v665_v1 }
  0xaf   :  { %v319_v7 = vpop.permute.xlu1 %318 }
  0xb7   :  { %v402_v5 = vpop.permute.xlu0 %401 }
  0xb8   :  { %550 = vmatmul.mubr.msk.f32.vlgmr.msra.gmra.mrb[4].mxu0 %vm57_vm2, %v402_v5 }
  0xbb   :  { %v145_v6 = vpop.permute.xlu0 %144 }
  0xbc   :  { %535 = vmatmul.mubr.msk.f32.vlgmr.msra.gmra.mrb[0].mxu1 %vm57_vm2, %v145_v6 }
  0xbd   :  { %543 = vmatpush3.msk.msra.mxu1 %vm61_vm1, %v50_v3  ;;  %544 = vmatprep.mubr.msk.f32.mxu1 %vm666_vm0, %v665_v1 }
  0xc0   :  { %545 = vmatmul.mubr.msk.f32.vlgmr.msra.gmra.mrb[2].mxu1 %vm57_vm2, %v319_v7 }
 0x10d   :  { %v131_v9 = vpop.f32.mrb[0].mxu0 }
 0x10e   :  { %v132_v10 = vadd.f32 %v502_v8, %v131_v9  ;;  %v531_v11 = vpop.f32.mrb[1].mxu0 }
 0x110   :  { %136 = vst.msk [vmem:[#allocation8] sm:$0xff] %vm135_vm3, %v132_v10 }
 0x17f   :  { %v301_v13 = vpop.f32.mrb[2].mxu0 }
 0x180   :  { %v302_v14 = vadd.f32 %v508_v12, %v301_v13  ;;  %v541_v15 = vpop.f32.mrb[3].mxu0 }
 0x182   :  { %306 = vrot.lane.b32.xlu1 %v302_v14, %s670_s21 }
 0x18b   :  { %v476_v17 = vpop.f32.mrb[4].mxu0 }
 0x18c   :  { %v477_v18 = vadd.f32 %v514_v16, %v476_v17  ;;  %v551_v19 = vpop.f32.mrb[5].mxu0 }
 0x18e   :  { %481 = vrot.lane.b32.xlu1 %v477_v18, %s671_s22 }
 0x18f   :  { %v214_v21 = vpop.f32.mrb[0].mxu1 }
 0x190   :  { %v215_v22 = vadd.f32 %v505_v20, %v214_v21  ;;  %v536_v23 = vpop.f32.mrb[1].mxu1 }
 0x192   :  { %219 = vrot.lane.b32.xlu0 %v215_v22, %s672_s23 }
 0x193   :  { %v388_v25 = vpop.f32.mrb[2].mxu1 }
 0x194   :  { %v389_v26 = vadd.f32 %v511_v24, %v388_v25  ;;  %v546_v27 = vpop.f32.mrb[3].mxu1 }
 0x196   :  { %393 = vrot.lane.b32.xlu0 %v389_v26, %s673_s24 }
 0x1f4   :  { %v307_v28 = vpop.permute.xlu1 %306 }
 0x200   :  { %v482_v31 = vpop.permute.xlu1 %481 }
 0x204   :  { %v220_v29 = vpop.permute.xlu0 %219 }
 0x205   :  { %223 = vst.msk [vmem:[#allocation8] sm:$0xff] %vm222_vm4, %v220_v29 }
 0x206   :  { %310 = vst.msk [vmem:[#allocation8] sm:$0xff] %vm309_vm5, %v307_v28 }
 0x208   :  { %v394_v30 = vpop.permute.xlu0 %393 }
 0x209   :  { %397 = vst.msk [vmem:[#allocation8] sm:$0xff] %vm396_vm6, %v394_v30 }
 0x20a   :  { %485 = vst.msk [vmem:[#allocation8] sm:$0xff] %vm484_vm7, %v482_v31 }
 0x20b   :  { %644 = shalt.err (!%p641_p0)
}
 0x20c   :  { %s645_s30 = scalar_lea.hbm %s761_s3, 128 }
 0x20d   :  { %p646_p1 = scmp.ne.s32.totalorder %s761_s3, %s645_s30  ;;  %p649_p2 = scmp.lt.u32.totalorder %s645_s30, %s761_s3 }
 0x20f   :  { %p651_p3 = pnand %p649_p2, %p646_p1 }
 0x211   :  { %654 = shalt.err (!%p651_p3)
}
 0x212   :  { %495 = dma.vmem_to_hbm [thread:$0]  %s493_s26, 128, %s761_s3, [#allocation4]  }
 0x213   :  { %659 = dma.done.wait [#allocation4], 128  }
 0x214   :  { %660 = vsyncadd [#allocation4], 4294967168 }
 0x215   :  { %499 = vsyncpa [#allocation3], 1 }
 0x216   :  { %500 = vsyncpa [#allocation6], 1 }
 0x217   :  { %501 = vsyncpa [#allocation4], 1 }

</bundles_post_ra>
